<compile_context>
chip_gen: v6e
topology: v6e:2x2x1
jax: 0.10.0
libtpu: 0.0.40
codegen_flags: <defaults>
</compile_context>

<pallas_src>
import functools

import jax
import jax.numpy as jnp
from jax import lax
from jax.experimental import pallas as pl
from jax.experimental.pallas import tpu as pltpu


def mha_kernel(q_ref, k_ref, v_ref, mask_ref,
               wq_ref, bq_ref, wk_ref, bk_ref, wv_ref, bv_ref, wo_ref, bo_ref,
               out_ref, attn_ref, *, sm_scale, compute_dtype):
    h = pl.program_id(2)          # head index (trailing reduction axis)

    q = q_ref[0]                  # (Tq, D)
    k = k_ref[0]                  # (S,  D)
    v = v_ref[0]                  # (S,  D)

    # Per-head projections: x @ W_h + b_h   (f32 accumulation on the MXU).
    Qh = jnp.dot(q, wq_ref[0], preferred_element_type=jnp.float32) + bq_ref[0]
    Kh = jnp.dot(k, wk_ref[0], preferred_element_type=jnp.float32) + bk_ref[0]
    Vh = jnp.dot(v, wv_ref[0], preferred_element_type=jnp.float32) + bv_ref[0]

    # Q @ K^T via dot_general contracting the last dims -> no XLU transpose.
    logits = lax.dot_general(
        Qh.astype(compute_dtype), Kh.astype(compute_dtype),
        (((1,), (1,)), ((), ())),
        preferred_element_type=jnp.float32) * sm_scale      # (Tq, S)

    # Additive mask, computed once per grid step (not per head-loop as before).
    neg_mask = mask_ref[0, 0] * (-1e9)                       # (1, S)
    logits = logits + neg_mask

    # Softmax over keys (f32), normalization via reciprocal (exact).
    m = jnp.max(logits, axis=-1, keepdims=True)
    e = jnp.exp(logits - m)
    denom = jnp.sum(e, axis=-1, keepdims=True)
    attn = e * pl.reciprocal(denom, approx=False)            # (Tq, S)

    attn_ref[0, 0] = attn                                    # (B, H, S, S) slab

    # Context and this head's slice of the output projection:
    #   out = concat_h(ctx_h) @ Wo + bo  ==  sum_h ctx_h @ Wo_h + bo
    ctx = jnp.dot(attn.astype(compute_dtype), Vh.astype(compute_dtype),
                  preferred_element_type=jnp.float32)        # (Tq, hd)
    partial = jnp.dot(ctx.astype(compute_dtype), wo_ref[0],
                      preferred_element_type=jnp.float32)    # (Tq, D)

    @pl.when(h == 0)
    def _init():
        out_ref[0] = partial + bo_ref[...]

    @pl.when(h != 0)
    def _accum():
        out_ref[0] = out_ref[0] + partial


def multi_head_attention(q, k, v, input_mask, params, num_heads,
                         *, block_q=None, compute_dtype=jnp.float32):
    B, S, D = q.shape
    assert D % num_heads == 0
    hd = D // num_heads

    if block_q is None:
        block_q = S if S <= 128 else 128
    assert S % block_q == 0
    n_q = S // block_q

    wq, bq, wk, bk, wv, bv, wo, bo = params

    # Weights are given in x @ W form (D_in, D_out).  Pre-split per head so the
    # kernel never slices along the lane dimension.
    def split_w_in(w):                               # (D, D) -> (H, D, hd)
        return jnp.transpose(w.reshape(D, num_heads, hd), (1, 0, 2)).astype(compute_dtype)

    wqh, wkh, wvh = split_w_in(wq), split_w_in(wk), split_w_in(wv)
    woh = wo.reshape(num_heads, hd, D).astype(compute_dtype)   # (H, hd, D)
    bqh = bq.reshape(num_heads, 1, hd).astype(jnp.float32)
    bkh = bk.reshape(num_heads, 1, hd).astype(jnp.float32)
    bvh = bv.reshape(num_heads, 1, hd).astype(jnp.float32)
    bo2 = bo.reshape(1, D).astype(jnp.float32)

    qc = q.astype(compute_dtype)
    kc = k.astype(compute_dtype)
    vc = v.astype(compute_dtype)
    maskf = input_mask.astype(jnp.float32)

    kernel = functools.partial(mha_kernel,
                               sm_scale=1.0 / (float(hd) ** 0.5),
                               compute_dtype=compute_dtype)

    # Grid: batch (parallel) x query tiles (parallel) x heads (reduction).
    grid = (B, n_q, num_heads)

    q_spec = pl.BlockSpec((1, block_q, D), lambda b, qi, h: (b, qi, 0))
    kv_spec = pl.BlockSpec((1, S, D), lambda b, qi, h: (b, 0, 0))
    mask_spec = pl.BlockSpec((1, 1, 1, S), lambda b, qi, h: (b, 0, 0, 0))
    win_spec = pl.BlockSpec((1, D, hd), lambda b, qi, h: (h, 0, 0))
    bin_spec = pl.BlockSpec((1, 1, hd), lambda b, qi, h: (h, 0, 0))
    wo_spec = pl.BlockSpec((1, hd, D), lambda b, qi, h: (h, 0, 0))
    bo_spec = pl.BlockSpec((1, D), lambda b, qi, h: (0, 0))

    out_specs = (
        pl.BlockSpec((1, block_q, D), lambda b, qi, h: (b, qi, 0)),       # resident over h
        pl.BlockSpec((1, 1, block_q, S), lambda b, qi, h: (b, h, qi, 0)),
    )
    out_shape = (
        jax.ShapeDtypeStruct((B, S, D), jnp.float32),
        jax.ShapeDtypeStruct((B, num_heads, S, S), jnp.float32),
    )

    return pl.pallas_call(
        kernel,
        out_shape=out_shape,
        grid_spec=pltpu.PrefetchScalarGridSpec(
            num_scalar_prefetch=0,
            grid=grid,
            in_specs=[q_spec, kv_spec, kv_spec, mask_spec,
                      win_spec, bin_spec, win_spec, bin_spec,
                      win_spec, bin_spec, wo_spec, bo_spec],
            out_specs=out_specs,
        ),
        compiler_params=pltpu.CompilerParams(
            # Head axis accumulates into the resident output block -> arbitrary.
            dimension_semantics=("parallel", "parallel", "arbitrary")),
        # TODO(synk): for large S on v6e raise vmem_limit_bytes instead of
        # shrinking block_q; for production shapes pad D / head_dim to 128.
    )(qc, kc, vc, maskf, wqh, bqh, wkh, bkh, wvh, bvh, woh, bo2)


def reference_mha(q, k, v, input_mask, params, num_heads):
    """Pure-JAX reference mirroring the PyTorch forward exactly."""
    wq, bq, wk, bk, wv, bv, wo, bo = params
    B, S, D = q.shape
    hd = D // num_heads

    def split_heads(x):
        return jnp.transpose(x.reshape(B, S, num_heads, hd), (0, 2, 1, 3))

    Q = split_heads(q @ wq + bq)
    K = split_heads(k @ wk + bk)
    V = split_heads(v @ wv + bv)
    logits = jnp.einsum('bhqd,bhkd->bhqk', Q, K) / (hd ** 0.5)
    logits = logits + input_mask * (-1e9)
    attn = jax.nn.softmax(logits, axis=-1)
    ctx = jnp.einsum('bhqk,bhkd->bhqd', attn, V)
    ctx = jnp.transpose(ctx, (0, 2, 1, 3)).reshape(B, S, D)
    out = ctx @ wo + bo
    return out, attn


if __name__ == "__main__":
    B, S, D, H = 2, 8, 32, 4

    key = jax.random.PRNGKey(0)
    keys = jax.random.split(key, 12)

    q = jax.random.normal(keys[0], (B, S, D), dtype=jnp.float32)
    k = jax.random.normal(keys[1], (B, S, D), dtype=jnp.float32)
    v = jax.random.normal(keys[2], (B, S, D), dtype=jnp.float32)
    # Mask: 1.0 marks positions to suppress (added as -1e9), 0.0 keeps.
    input_mask = (jax.random.uniform(keys[3], (B, 1, 1, S)) > 0.7).astype(jnp.float32)

    scale = 1.0 / (D ** 0.5)
    params = (
        jax.random.normal(keys[4], (D, D), dtype=jnp.float32) * scale,   # Wq (x@W form)
        jax.random.normal(keys[5], (D,), dtype=jnp.float32) * 0.01,      # bq
        jax.random.normal(keys[6], (D, D), dtype=jnp.float32) * scale,   # Wk
        jax.random.normal(keys[7], (D,), dtype=jnp.float32) * 0.01,      # bk
        jax.random.normal(keys[8], (D, D), dtype=jnp.float32) * scale,   # Wv
        jax.random.normal(keys[9], (D,), dtype=jnp.float32) * 0.01,      # bv
        jax.random.normal(keys[10], (D, D), dtype=jnp.float32) * scale,  # Wo (dense)
        jax.random.normal(keys[11], (D,), dtype=jnp.float32) * 0.01,     # bo
    )

    out, attn = multi_head_attention(q, k, v, input_mask, params, H)
    out = jax.block_until_ready(out)
    attn = jax.block_until_ready(attn)

    ref_out, ref_attn = reference_mha(q, k, v, input_mask, params, H)

    assert out.shape == (B, S, D) and attn.shape == (B, H, S, S)
    assert jnp.allclose(out, ref_out, atol=1e-4, rtol=1e-4)
    assert jnp.allclose(attn, ref_attn, atol=1e-5, rtol=1e-4)

    print("KERNEL_OK")
</pallas_src>

<mosaic_0001>
module attributes {stable_mosaic.version = 11 : i64} {
  func.func @mha_kernel(%arg0: i32, %arg1: i32, %arg2: i32, %arg3: memref<1x8x32xf32, #tpu.memory_space<vmem>>, %arg4: memref<1x8x32xf32, #tpu.memory_space<vmem>>, %arg5: memref<1x8x32xf32, #tpu.memory_space<vmem>>, %arg6: memref<1x1x1x8xf32, #tpu.memory_space<vmem>>, %arg7: memref<1x32x8xf32, #tpu.memory_space<vmem>>, %arg8: memref<1x1x8xf32, #tpu.memory_space<vmem>>, %arg9: memref<1x32x8xf32, #tpu.memory_space<vmem>>, %arg10: memref<1x1x8xf32, #tpu.memory_space<vmem>>, %arg11: memref<1x32x8xf32, #tpu.memory_space<vmem>>, %arg12: memref<1x1x8xf32, #tpu.memory_space<vmem>>, %arg13: memref<1x8x32xf32, #tpu.memory_space<vmem>>, %arg14: memref<1x32xf32, #tpu.memory_space<vmem>>, %arg15: memref<1x8x32xf32, #tpu.memory_space<vmem>>, %arg16: memref<1x1x8x8xf32, #tpu.memory_space<vmem>>) attributes {dimension_semantics = [#tpu.dimension_semantics<parallel>, #tpu.dimension_semantics<parallel>, #tpu.dimension_semantics<arbitrary>], iteration_bounds = array<i64: 2, 1, 4>, scalar_prefetch = 0 : i64, scratch_operands = 0 : i64, tpu.core_type = #tpu.core_type<tc>, window_params = [{transform_indices = @transform_0, window_bounds = array<i64: 1, 8, 32>}, {transform_indices = @transform_1, window_bounds = array<i64: 1, 8, 32>}, {transform_indices = @transform_2, window_bounds = array<i64: 1, 8, 32>}, {transform_indices = @transform_3, window_bounds = array<i64: 1, 1, 1, 8>}, {transform_indices = @transform_4, window_bounds = array<i64: 1, 32, 8>}, {transform_indices = @transform_5, window_bounds = array<i64: 1, 1, 8>}, {transform_indices = @transform_6, window_bounds = array<i64: 1, 32, 8>}, {transform_indices = @transform_7, window_bounds = array<i64: 1, 1, 8>}, {transform_indices = @transform_8, window_bounds = array<i64: 1, 32, 8>}, {transform_indices = @transform_9, window_bounds = array<i64: 1, 1, 8>}, {transform_indices = @transform_10, window_bounds = array<i64: 1, 8, 32>}, {pipeline_mode = #tpu.pipeline_mode<synchronous>, transform_indices = @transform_11, window_bounds = array<i64: 1, 32>}, {transform_indices = @transform_12, window_bounds = array<i64: 1, 8, 32>}, {transform_indices = @transform_13, window_bounds = array<i64: 1, 1, 8, 8>}]} {
    %c0 = arith.constant 0 : index
    %c0_0 = arith.constant 0 : index
    %c0_1 = arith.constant 0 : index
    %0 = vector.load %arg3[%c0, %c0_0, %c0_1] : memref<1x8x32xf32, #tpu.memory_space<vmem>>, vector<1x8x32xf32>
    %1 = vector.shape_cast %0 : vector<1x8x32xf32> to vector<8x32xf32>
    %c0_2 = arith.constant 0 : index
    %c0_3 = arith.constant 0 : index
    %c0_4 = arith.constant 0 : index
    %2 = vector.load %arg4[%c0_2, %c0_3, %c0_4] : memref<1x8x32xf32, #tpu.memory_space<vmem>>, vector<1x8x32xf32>
    %3 = vector.shape_cast %2 : vector<1x8x32xf32> to vector<8x32xf32>
    %c0_5 = arith.constant 0 : index
    %c0_6 = arith.constant 0 : index
    %c0_7 = arith.constant 0 : index
    %4 = vector.load %arg5[%c0_5, %c0_6, %c0_7] : memref<1x8x32xf32, #tpu.memory_space<vmem>>, vector<1x8x32xf32>
    %5 = vector.shape_cast %4 : vector<1x8x32xf32> to vector<8x32xf32>
    %c0_8 = arith.constant 0 : index
    %c0_9 = arith.constant 0 : index
    %c0_10 = arith.constant 0 : index
    %6 = vector.load %arg7[%c0_8, %c0_9, %c0_10] : memref<1x32x8xf32, #tpu.memory_space<vmem>>, vector<1x32x8xf32>
    %7 = vector.shape_cast %6 : vector<1x32x8xf32> to vector<32x8xf32>
    %cst = arith.constant dense<0.000000e+00> : vector<8x8xf32>
    %8 = tpu.matmul %1, %7, %cst {dimension_numbers = #tpu.dot_dimension_numbers<[1], [0], [0], [1], [0, 0, 1, 1], [], []>} : vector<8x32xf32>, vector<32x8xf32>, vector<8x8xf32> -> vector<8x8xf32>
    %c0_11 = arith.constant 0 : index
    %c0_12 = arith.constant 0 : index
    %c0_13 = arith.constant 0 : index
    %9 = vector.load %arg8[%c0_11, %c0_12, %c0_13] : memref<1x1x8xf32, #tpu.memory_space<vmem>>, vector<1x1x8xf32>
    %10 = vector.shape_cast %9 : vector<1x1x8xf32> to vector<1x8xf32>
    %11 = vector.broadcast %10 : vector<1x8xf32> to vector<8x8xf32>
    %12 = arith.addf %8, %11 : vector<8x8xf32>
    %c0_14 = arith.constant 0 : index
    %c0_15 = arith.constant 0 : index
    %c0_16 = arith.constant 0 : index
    %13 = vector.load %arg9[%c0_14, %c0_15, %c0_16] : memref<1x32x8xf32, #tpu.memory_space<vmem>>, vector<1x32x8xf32>
    %14 = vector.shape_cast %13 : vector<1x32x8xf32> to vector<32x8xf32>
    %cst_17 = arith.constant dense<0.000000e+00> : vector<8x8xf32>
    %15 = tpu.matmul %3, %14, %cst_17 {dimension_numbers = #tpu.dot_dimension_numbers<[1], [0], [0], [1], [0, 0, 1, 1], [], []>} : vector<8x32xf32>, vector<32x8xf32>, vector<8x8xf32> -> vector<8x8xf32>
    %c0_18 = arith.constant 0 : index
    %c0_19 = arith.constant 0 : index
    %c0_20 = arith.constant 0 : index
    %16 = vector.load %arg10[%c0_18, %c0_19, %c0_20] : memref<1x1x8xf32, #tpu.memory_space<vmem>>, vector<1x1x8xf32>
    %17 = vector.shape_cast %16 : vector<1x1x8xf32> to vector<1x8xf32>
    %18 = vector.broadcast %17 : vector<1x8xf32> to vector<8x8xf32>
    %19 = arith.addf %15, %18 : vector<8x8xf32>
    %c0_21 = arith.constant 0 : index
    %c0_22 = arith.constant 0 : index
    %c0_23 = arith.constant 0 : index
    %20 = vector.load %arg11[%c0_21, %c0_22, %c0_23] : memref<1x32x8xf32, #tpu.memory_space<vmem>>, vector<1x32x8xf32>
    %21 = vector.shape_cast %20 : vector<1x32x8xf32> to vector<32x8xf32>
    %cst_24 = arith.constant dense<0.000000e+00> : vector<8x8xf32>
    %22 = tpu.matmul %5, %21, %cst_24 {dimension_numbers = #tpu.dot_dimension_numbers<[1], [0], [0], [1], [0, 0, 1, 1], [], []>} : vector<8x32xf32>, vector<32x8xf32>, vector<8x8xf32> -> vector<8x8xf32>
    %c0_25 = arith.constant 0 : index
    %c0_26 = arith.constant 0 : index
    %c0_27 = arith.constant 0 : index
    %23 = vector.load %arg12[%c0_25, %c0_26, %c0_27] : memref<1x1x8xf32, #tpu.memory_space<vmem>>, vector<1x1x8xf32>
    %24 = vector.shape_cast %23 : vector<1x1x8xf32> to vector<1x8xf32>
    %25 = vector.broadcast %24 : vector<1x8xf32> to vector<8x8xf32>
    %26 = arith.addf %22, %25 : vector<8x8xf32>
    %cst_28 = arith.constant dense<0.000000e+00> : vector<8x8xf32>
    %27 = tpu.matmul %12, %19, %cst_28 {dimension_numbers = #tpu.dot_dimension_numbers<[1], [1], [0], [0], [0, 0, 1, 0], [], []>} : vector<8x8xf32>, vector<8x8xf32>, vector<8x8xf32> -> vector<8x8xf32>
    %cst_29 = arith.constant 0.353553385 : f32
    %28 = vector.broadcast %cst_29 : f32 to vector<8x8xf32>
    %29 = arith.mulf %27, %28 : vector<8x8xf32>
    %c0_30 = arith.constant 0 : index
    %c0_31 = arith.constant 0 : index
    %c0_32 = arith.constant 0 : index
    %c0_33 = arith.constant 0 : index
    %30 = vector.load %arg6[%c0_30, %c0_31, %c0_32, %c0_33] : memref<1x1x1x8xf32, #tpu.memory_space<vmem>>, vector<1x1x1x8xf32>
    %31 = vector.shape_cast %30 : vector<1x1x1x8xf32> to vector<1x8xf32>
    %cst_34 = arith.constant -1.000000e+09 : f32
    %32 = vector.broadcast %cst_34 : f32 to vector<1x8xf32>
    %33 = arith.mulf %31, %32 : vector<1x8xf32>
    %34 = vector.broadcast %33 : vector<1x8xf32> to vector<8x8xf32>
    %35 = arith.addf %29, %34 : vector<8x8xf32>
    %cst_35 = arith.constant dense<0xFF800000> : vector<8xf32>
    %36 = vector.multi_reduction <maximumf>, %35, %cst_35 [1] : vector<8x8xf32> to vector<8xf32>
    %37 = vector.shape_cast %36 : vector<8xf32> to vector<8x1xf32>
    %38 = vector.broadcast %37 : vector<8x1xf32> to vector<8x8xf32>
    %39 = arith.subf %35, %38 : vector<8x8xf32>
    %40 = math.exp %39 : vector<8x8xf32>
    %cst_36 = arith.constant dense<0.000000e+00> : vector<8xf32>
    %41 = vector.multi_reduction <add>, %40, %cst_36 [1] : vector<8x8xf32> to vector<8xf32>
    %42 = vector.shape_cast %41 : vector<8xf32> to vector<8x1xf32>
    %43 = tpu.reciprocal %42 : vector<8x1xf32> -> vector<8x1xf32>
    %44 = vector.broadcast %43 : vector<8x1xf32> to vector<8x8xf32>
    %45 = arith.mulf %40, %44 : vector<8x8xf32>
    %c0_37 = arith.constant 0 : index
    %c0_38 = arith.constant 0 : index
    %c0_39 = arith.constant 0 : index
    %c0_40 = arith.constant 0 : index
    %46 = vector.load %arg16[%c0_37, %c0_38, %c0_39, %c0_40] : memref<1x1x8x8xf32, #tpu.memory_space<vmem>>, vector<1x1x8x8xf32>
    %47 = vector.shape_cast %46 : vector<1x1x8x8xf32> to vector<8x8xf32>
    %48 = vector.shape_cast %45 : vector<8x8xf32> to vector<1x1x8x8xf32>
    tpu.vector_store %arg16[%c0_37, %c0_38, %c0_39, %c0_40], %48 {strides = array<i32>} : memref<1x1x8x8xf32, #tpu.memory_space<vmem>>, vector<1x1x8x8xf32>,
    %cst_41 = arith.constant dense<0.000000e+00> : vector<8x8xf32>
    %49 = tpu.matmul %45, %26, %cst_41 {dimension_numbers = #tpu.dot_dimension_numbers<[1], [0], [0], [1], [0, 0, 1, 1], [], []>} : vector<8x8xf32>, vector<8x8xf32>, vector<8x8xf32> -> vector<8x8xf32>
    %c0_42 = arith.constant 0 : index
    %c0_43 = arith.constant 0 : index
    %c0_44 = arith.constant 0 : index
    %50 = vector.load %arg13[%c0_42, %c0_43, %c0_44] : memref<1x8x32xf32, #tpu.memory_space<vmem>>, vector<1x8x32xf32>
    %51 = vector.shape_cast %50 : vector<1x8x32xf32> to vector<8x32xf32>
    %cst_45 = arith.constant dense<0.000000e+00> : vector<8x32xf32>
    %52 = tpu.matmul %49, %51, %cst_45 {dimension_numbers = #tpu.dot_dimension_numbers<[1], [0], [0], [1], [0, 0, 1, 1], [], []>} : vector<8x8xf32>, vector<8x32xf32>, vector<8x32xf32> -> vector<8x32xf32>
    %c0_i32 = arith.constant 0 : i32
    %53 = arith.cmpi eq, %arg2, %c0_i32 : i32
    %54 = arith.extui %53 : i1 to i32
    %c0_i32_46 = arith.constant 0 : i32
    %55 = arith.cmpi ne, %54, %c0_i32_46 : i32
    scf.if %55 {
      %c0_49 = arith.constant 0 : index
      %c0_50 = arith.constant 0 : index
      %59 = vector.load %arg14[%c0_49, %c0_50] : memref<1x32xf32, #tpu.memory_space<vmem>>, vector<1x32xf32>
      %60 = vector.broadcast %59 : vector<1x32xf32> to vector<8x32xf32>
      %61 = arith.addf %52, %60 : vector<8x32xf32>
      %c0_51 = arith.constant 0 : index
      %c0_52 = arith.constant 0 : index
      %c0_53 = arith.constant 0 : index
      %62 = vector.load %arg15[%c0_51, %c0_52, %c0_53] : memref<1x8x32xf32, #tpu.memory_space<vmem>>, vector<1x8x32xf32>
      %63 = vector.shape_cast %62 : vector<1x8x32xf32> to vector<8x32xf32>
      %64 = vector.shape_cast %61 : vector<8x32xf32> to vector<1x8x32xf32>
      tpu.vector_store %arg15[%c0_51, %c0_52, %c0_53], %64 {strides = array<i32>} : memref<1x8x32xf32, #tpu.memory_space<vmem>>, vector<1x8x32xf32>,
    } else {
    }
    %c0_i32_47 = arith.constant 0 : i32
    %56 = arith.cmpi ne, %arg2, %c0_i32_47 : i32
    %57 = arith.extui %56 : i1 to i32
    %c0_i32_48 = arith.constant 0 : i32
    %58 = arith.cmpi ne, %57, %c0_i32_48 : i32
    scf.if %58 {
      %c0_49 = arith.constant 0 : index
      %c0_50 = arith.constant 0 : index
      %c0_51 = arith.constant 0 : index
      %59 = vector.load %arg15[%c0_49, %c0_50, %c0_51] : memref<1x8x32xf32, #tpu.memory_space<vmem>>, vector<1x8x32xf32>
      %60 = vector.shape_cast %59 : vector<1x8x32xf32> to vector<8x32xf32>
      %61 = arith.addf %60, %52 : vector<8x32xf32>
      %c0_52 = arith.constant 0 : index
      %c0_53 = arith.constant 0 : index
      %c0_54 = arith.constant 0 : index
      %62 = vector.load %arg15[%c0_52, %c0_53, %c0_54] : memref<1x8x32xf32, #tpu.memory_space<vmem>>, vector<1x8x32xf32>
      %63 = vector.shape_cast %62 : vector<1x8x32xf32> to vector<8x32xf32>
      %64 = vector.shape_cast %61 : vector<8x32xf32> to vector<1x8x32xf32>
      tpu.vector_store %arg15[%c0_52, %c0_53, %c0_54], %64 {strides = array<i32>} : memref<1x8x32xf32, #tpu.memory_space<vmem>>, vector<1x8x32xf32>,
    } else {
    }
    return
  }
  func.func @transform_0(%arg0: i32, %arg1: i32, %arg2: i32) -> (i32, i32, i32) {
    %c0_i32 = arith.constant 0 : i32
    %c0_i32_0 = arith.constant 0 : i32
    return %arg0, %arg1, %c0_i32 : i32, i32, i32
  }
  func.func @transform_1(%arg0: i32, %arg1: i32, %arg2: i32) -> (i32, i32, i32) {
    %c0_i32 = arith.constant 0 : i32
    %c0_i32_0 = arith.constant 0 : i32
    %c0_i32_1 = arith.constant 0 : i32
    return %arg0, %c0_i32, %c0_i32_0 : i32, i32, i32
  }
  func.func @transform_2(%arg0: i32, %arg1: i32, %arg2: i32) -> (i32, i32, i32) {
    %c0_i32 = arith.constant 0 : i32
    %c0_i32_0 = arith.constant 0 : i32
    %c0_i32_1 = arith.constant 0 : i32
    return %arg0, %c0_i32, %c0_i32_0 : i32, i32, i32
  }
  func.func @transform_3(%arg0: i32, %arg1: i32, %arg2: i32) -> (i32, i32, i32, i32) {
    %c0_i32 = arith.constant 0 : i32
    %c0_i32_0 = arith.constant 0 : i32
    %c0_i32_1 = arith.constant 0 : i32
    %c0_i32_2 = arith.constant 0 : i32
    return %arg0, %c0_i32, %c0_i32_0, %c0_i32_1 : i32, i32, i32, i32
  }
  func.func @transform_4(%arg0: i32, %arg1: i32, %arg2: i32) -> (i32, i32, i32) {
    %c0_i32 = arith.constant 0 : i32
    %c0_i32_0 = arith.constant 0 : i32
    %c0_i32_1 = arith.constant 0 : i32
    return %arg2, %c0_i32, %c0_i32_0 : i32, i32, i32
  }
  func.func @transform_5(%arg0: i32, %arg1: i32, %arg2: i32) -> (i32, i32, i32) {
    %c0_i32 = arith.constant 0 : i32
    %c0_i32_0 = arith.constant 0 : i32
    %c0_i32_1 = arith.constant 0 : i32
    return %arg2, %c0_i32, %c0_i32_0 : i32, i32, i32
  }
  func.func @transform_6(%arg0: i32, %arg1: i32, %arg2: i32) -> (i32, i32, i32) {
    %c0_i32 = arith.constant 0 : i32
    %c0_i32_0 = arith.constant 0 : i32
    %c0_i32_1 = arith.constant 0 : i32
    return %arg2, %c0_i32, %c0_i32_0 : i32, i32, i32
  }
  func.func @transform_7(%arg0: i32, %arg1: i32, %arg2: i32) -> (i32, i32, i32) {
    %c0_i32 = arith.constant 0 : i32
    %c0_i32_0 = arith.constant 0 : i32
    %c0_i32_1 = arith.constant 0 : i32
    return %arg2, %c0_i32, %c0_i32_0 : i32, i32, i32
  }
  func.func @transform_8(%arg0: i32, %arg1: i32, %arg2: i32) -> (i32, i32, i32) {
    %c0_i32 = arith.constant 0 : i32
    %c0_i32_0 = arith.constant 0 : i32
    %c0_i32_1 = arith.constant 0 : i32
    return %arg2, %c0_i32, %c0_i32_0 : i32, i32, i32
  }
  func.func @transform_9(%arg0: i32, %arg1: i32, %arg2: i32) -> (i32, i32, i32) {
    %c0_i32 = arith.constant 0 : i32
    %c0_i32_0 = arith.constant 0 : i32
    %c0_i32_1 = arith.constant 0 : i32
    return %arg2, %c0_i32, %c0_i32_0 : i32, i32, i32
  }
  func.func @transform_10(%arg0: i32, %arg1: i32, %arg2: i32) -> (i32, i32, i32) {
    %c0_i32 = arith.constant 0 : i32
    %c0_i32_0 = arith.constant 0 : i32
    %c0_i32_1 = arith.constant 0 : i32
    return %arg2, %c0_i32, %c0_i32_0 : i32, i32, i32
  }
  func.func @transform_11(%arg0: i32, %arg1: i32, %arg2: i32) -> (i32, i32) {
    %c0_i32 = arith.constant 0 : i32
    %c0_i32_0 = arith.constant 0 : i32
    %c0_i32_1 = arith.constant 0 : i32
    return %c0_i32, %c0_i32_0 : i32, i32
  }
  func.func @transform_12(%arg0: i32, %arg1: i32, %arg2: i32) -> (i32, i32, i32) {
    %c0_i32 = arith.constant 0 : i32
    %c0_i32_0 = arith.constant 0 : i32
    return %arg0, %arg1, %c0_i32 : i32, i32, i32
  }
  func.func @transform_13(%arg0: i32, %arg1: i32, %arg2: i32) -> (i32, i32, i32, i32) {
    %c0_i32 = arith.constant 0 : i32
    %c0_i32_0 = arith.constant 0 : i32
    return %arg0, %arg2, %arg1, %c0_i32 : i32, i32, i32, i32
  }
}

</mosaic_0001>

<bundles_post_ra>
// kernel: tpu_custom_call.1
= control target key start
LH: loop header
LB: loop body
LE: loop exit
PB: predicated region body
PF: predicated region fallthrough
CT: control target
= control target key end

     0   :  { %s2178_s0 = inlined_call_operand.vmem [shape: f32[2,8,32], index: 0, kind: input, shape index: {}]   ;;  %s2179_s1 = inlined_call_operand.vmem [shape: f32[2,8,32], index: 1, kind: input, shape index: {}]   ;;  %s2180_s2 = inlined_call_operand.vmem [shape: f32[2,8,32], index: 2, kind: input, shape index: {}]   ;;  %s2181_s3 = inlined_call_operand.vmem [shape: f32[2,1,1,8], index: 3, kind: input, shape index: {}]   ;;  %s2182_s4 = inlined_call_operand.vmem [shape: f32[4,32,8], index: 4, kind: input, shape index: {}]   ;;  %s2183_s5 = inlined_call_operand.vmem [shape: f32[4,1,8], index: 5, kind: input, shape index: {}]   ;;  %s2184_s6 = inlined_call_operand.vmem [shape: f32[4,32,8], index: 6, kind: input, shape index: {}]   ;;  %s2185_s7 = inlined_call_operand.vmem [shape: f32[4,1,8], index: 7, kind: input, shape index: {}]   ;;  %s2186_s8 = inlined_call_operand.vmem [shape: f32[4,32,8], index: 8, kind: input, shape index: {}]   ;;  %s2187_s9 = inlined_call_operand.vmem [shape: f32[4,1,8], index: 9, kind: input, shape index: {}]   ;;  %s2188_s10 = inlined_call_operand.vmem [shape: f32[4,8,32], index: 10, kind: input, shape index: {}]   ;;  %s2189_s11 = inlined_call_operand.vmem [shape: f32[1,32], index: 11, kind: input, shape index: {}]   ;;  %s2190_s12 = inlined_call_operand.hbm [shape: f32[2,8,32], index: 12, kind: output, shape index: {0}]   ;;  %s2191_s13 = inlined_call_operand.hbm [shape: f32[2,4,8,8], index: 13, kind: output, shape index: {1}]  }
   0x1   :  { %2205 = sst [smem:[#allocation16_spill]] %s2178_s0 }
   0x2   :  { %2206 = sst [smem:[#allocation17_spill]] %s2179_s1 }
   0x3   :  { %2207 = sst [smem:[#allocation18_spill]] %s2180_s2 }
   0x4   :  { %2208 = sst [smem:[#allocation19_spill]] %s2181_s3 }
   0x5   :  { %2209 = sst [smem:[#allocation20_spill]] %s2182_s4 }
   0x6   :  { %2210 = sst [smem:[#allocation21_spill]] %s2183_s5 }
   0x7   :  { %2211 = sst [smem:[#allocation22_spill]] %s2184_s6 }
   0x8   :  { %2212 = sst [smem:[#allocation23_spill]] %s2185_s7 }
   0x9   :  { %2213 = sst [smem:[#allocation24_spill]] %s2187_s9 }
   0xa   :  { %2214 = sst [smem:[#allocation25_spill]] %s2188_s10 }
   0xb   :  { %2215 = sst [smem:[#allocation26_spill]] %s2189_s11 }
   0xc   :  { %2216 = sst [smem:[#allocation27_spill]] %s2190_s12 }
   0xd   :  { %2217 = sst [smem:[#allocation28_spill]] %s2191_s13 }
   0xe   :  { %19 = vsyncpa [#allocation3], 0 }
   0xf   :  { %21 = vsyncpa [#allocation3 + $0x1], 0 }
  0x10   :  { %22 = vsyncpa [#allocation5], 0 }
  0x11   :  { %24 = vsyncpa [#allocation5 + $0x1], 0  ;;  %s1865_s25 = smov 0   ;;  %s1867_s26 = smov 0  }
  0x12   :  { %s1869_s27 = smov 0   ;;  %s1871_s28 = smov 0  }
  0x13   :  { %s1873_s29 = smov 0   ;;  %s1875_s30 = smov 0  }
  0x14   :  { %s1877_s14 = smov 0   ;;  %s1879_s15 = smov 0  }
  0x15   :  { %s1881_s16 = smov 0   ;;  %s1883_s17 = smov 0  }
  0x16   :  { %s1885_s18 = smov 0  }
  0x17 LB: > { %2218 = sst [smem:[#allocation8_spill]] %s1761_s28  ;;  %s1428_s19 = sadd.s32 4294967295, %s1789_s18   ;;  %s1789_s18 = sphi %s1885_s18, %s30_s18   ;;  %s1785_s17 = sphi %s1883_s17, %s2258_s17   ;;  %s1781_s16 = sphi %s1881_s16, %s2264_s16   ;;  %s1777_s15 = sphi %s1879_s15, %s2256_s15   ;;  %s1773_s14 = sphi %s1877_s14, %s2255_s14   ;;  %s1769_s30 = sphi %s1875_s30, %s2254_s30   ;;  %s1765_s29 = sphi %s1873_s29, %s2263_s29   ;;  %s1761_s28 = sphi %s1871_s28, %s2262_s28   ;;  %s1757_s27 = sphi %s1869_s27, %s2261_s27   ;;  %s1753_s26 = sphi %s1867_s26, %s2260_s26   ;;  %s1749_s25 = sphi %s1865_s25, %s2259_s25  }
  0x18   : > { %2219 = sst [smem:[#allocation9_spill]] %s1769_s30  ;;  %s1429_s20 = sadd.s32 4294967294, %s1789_s18  }
  0x19   : > { %2220 = sst [smem:[#allocation10_spill]] %s1781_s16  ;;  %s42_s21 = sadd.s32 1, %s1781_s16 }
  0x1a   : > { %2221 = sst [smem:[#allocation11_spill]] %s1785_s17  ;;  %s49_s22 = sadd.s32 1, %s1785_s17 }
  0x1b   : > { %p43_p0 = scmp.ge.s32.totalorder %s42_s21, 4  ;;  %s367_s23 = sadd.s32 1, %s1769_s30 }
  0x1c   : > { %p377_p1 = scmp.ne.s32.totalorder %s1769_s30, %s1765_s29  ;;  %p1927_p2 = scmp.eq.s32.totalorder %s1428_s19, 7 }
  0x1d   : > { %s2266_s21 = smov (%p43_p0, %s42_s21), 0  ;;  %s2268_s22 = smov (!%p43_p0, %s49_s22), %s1785_s17 }
  0x1e   : > { %2223 = sst [smem:[#allocation12_spill]] %s2266_s21  ;;  %p1936_p3 = por %p1927_p2, %p377_p1 }
  0x1f   : > { %p383_p4 = scmp.ne.s32.totalorder %s1765_s29, %s1761_s28  ;;  %p51_p5 = scmp.ge.s32.totalorder %s2268_s22, 2 }
  0x20   : > { %s2224_s13 = scalar_select %p1936_p3, 1, 0 }
  0x21   : > { %p1942_p6 = scmp.eq.s32.totalorder %s1429_s20, 7  ;;  %s391_s12 = ssub.s32 %s1781_s16, %s2266_s21 }
  0x22   : > { %2225 = sst [smem:[#allocation13_spill]] %s2224_s13  ;;  %s397_s11 = sadd.s32 1, %s1757_s27 }
  0x23   : > { %s2270_s22 = smov (%p51_p5, %s2268_s22), 0  ;;  %p1953_p7 = por %p1942_p6, %p383_p4 }
  0x24   : > { %2227 = sst [smem:[#allocation14_spill]] %s2270_s22  ;;  %p407_p8 = scmp.ne.s32.totalorder %s1757_s27, %s1753_s26 }
  0x25   : > { %s2228_s10 = scalar_select %p1953_p7, 1, 0 }
  0x26   : > { %s362_s28 = ssub.s32 %s1785_s17, %s2270_s22  ;;  %p413_p9 = scmp.ne.s32.totalorder %s1753_s26, %s1749_s25 }
  0x27   : > { %p365_p10 = scmp.eq.s32.totalorder %s362_s28, 0  ;;  %s392_s20 = sor.u32 %s391_s12, %s362_s28 }
  0x28   : > { %p395_p11 = scmp.eq.s32.totalorder %s392_s20, 0  ;;  %p1965_p12 = por %p407_p8, %p1927_p2 }
  0x29   : > { %s1970_s21 = scalar_select %p365_p10, %s1769_s30, %s367_s23  }
  0x2a   : > { %s1973_s16 = scalar_select %p395_p11, %s1757_s27, %s397_s11  }
  0x2b   : > { %2230 = sst [smem:[#allocation15_spill]] %s1970_s21  ;;  %p1977_p13 = por %p413_p9, %p1942_p6 }
  0x2c   : > { %p1432_p0 = scmp.ge.s32.totalorder %s1789_s18, 1  ;;  %p514_p1 = scmp.lt.s32.totalorder %s1789_s18, 9 }
  0x2d   : > { %s2231_s9 = scalar_select %p1977_p13, 1, 0 }
  0x2e   : > { %p515_p4 = pnand %p1432_p0, %p514_p1 }
  0x2f   : > { %p622_p2 = scmp.lt.s32.totalorder (!%p515_p4), %s1773_s14, 3  ;;  %s2199_s12 = sand.u32 (!%p515_p4), 1, %s1765_s29  }
  0x30   : > { %518 = sbr.rel (%p515_p4) target bundleno = 1228 (0x4cc), region = 68  ;;  %s1988_s11 = sshll.u32 (!%p515_p4), %s2199_s12, 3 }
  0x31   : > { %p604_p5 = scmp.lt.s32.totalorder (!%p515_p4), %s1777_s15, 1  ;;  %s2232_s6 = sld [smem:[#allocation22_spill]] (!%p515_p4) }
  0x32   : > { %s2233_s4 = sld [smem:[#allocation20_spill]] (!%p515_p4)  ;;  %p1455_p6 = scmp.ne.s32.totalorder (!%p515_p4), %s1773_s14, 0 }
  0x33   : > { %s2234_s1 = sld [smem:[#allocation17_spill]] (!%p515_p4) }
  0x34   : > { %s2235_s0 = sld [smem:[#allocation16_spill]] (!%p515_p4) }
  0x35   : > { %v1791_v0 = vmov 0.0   ;;  %s1993_s28 = scalar_select %p622_p2, %s1773_s14, 3  ;;  %vm1792_vm0 = vmmov 0   ;;  %vm664_vm1 = vcmask 261120   ;;  %vm906_vm2 = vcmask 64512  }
  0x36   : > { %1500 = vmatprep.subr.mxu1 %v1791_v0  ;;  %1489 = vmatprep.subr.mxu0 %v1791_v0  ;;  %s2011_s21 = scalar_select %p604_p5, %s1777_s15, 1  ;;  %v987_v24 = vlaneseq }
  0x37   : > { %1508 = vmatprep.mubr.msk.f32.mxu1 %vm1792_vm0, %v1791_v0  ;;  %1497 = vmatprep.mubr.msk.f32.mxu0 %vm1792_vm0, %v1791_v0  ;;  %s2000_s23 = sshll.u32 %s1993_s28, 5  ;;  %s2236_s7 = sld [smem:[#allocation23_spill]] }
  0x38   : > { %s634_s20 = scalar_lea.vmem %s2232_s6, %s2000_s23  ;;  %s626_s17 = scalar_lea.vmem %s2233_s4, %s2000_s23  ;;  %v988_v25 = vshrl.u32 %v987_v24, 7 }
  0x39   : > { %v741_v1 = vld [vmem:[%s634_s20 + $0x18] sm:$0xff]  ;;  %v740_v3 = vld [vmem:[%s634_s20 + $0x10] sm:$0xff]  ;;  %v739_v5 = vld [vmem:[%s634_s20 + $0x8] sm:$0xff]  ;;  %s2016_s24 = sshll.u32 %s2011_s21, 3  ;;  %s2237_s5 = sld [smem:[#allocation21_spill]] }
  0x3a   : > { %v656_v2 = vld [vmem:[%s626_s17 + $0x18] sm:$0xff]  ;;  %1501 = vmatpush3.msra.mxu1 %v741_v1  ;;  %v655_v4 = vld [vmem:[%s626_s17 + $0x10] sm:$0xff]  ;;  %v654_v6 = vld [vmem:[%s626_s17 + $0x8] sm:$0xff]  ;;  %s614_s19 = scalar_lea.vmem %s2234_s1, %s2016_s24  ;;  %s610_s30 = scalar_lea.vmem %s2235_s0, %s2016_s24  ;;  %v989_v28 = vsub.s32 0, %v988_v25 }
  0x3b   : > { %1490 = vmatpush3.msra.mxu0 %v656_v2  ;;  %1502 = vmatprep.subr.mxu1 %v1791_v0  ;;  %v738_v7 = vld [vmem:[%s634_s20] sm:$0xff]  ;;  %s642_s4 = scalar_lea.vmem %s2186_s8, %s2000_s23  ;;  %s2238_s2 = sld [smem:[#allocation18_spill]] }
  0x3c   : > { %1491 = vmatprep.subr.mxu0 %v1791_v0  ;;  %1503 = vmatpush3.msra.mxu1 %v740_v3  ;;  %v653_v8 = vld [vmem:[%s626_s17] sm:$0xff]  ;;  %v825_v19 = vld [vmem:[%s642_s4 + $0x18] sm:$0xff]  ;;  %v824_v20 = vld [vmem:[%s642_s4 + $0x10] sm:$0xff]  ;;  %s2239_s3 = sld [smem:[#allocation19_spill]]  ;;  %s2203_s20 = sand.u32 1, %s1753_s26  }
  0x3d   : > { %1492 = vmatpush3.msra.mxu0 %v655_v4  ;;  %1504 = vmatprep.subr.mxu1 %v1791_v0  ;;  %v651_v9 = vld [vmem:[%s614_s19] sm:$0xff]  ;;  %v823_v21 = vld [vmem:[%s642_s4 + $0x8] sm:$0xff]  ;;  %s2240_s12 = sld [smem:[#allocation24_spill]] }
  0x3e   : > { %1493 = vmatprep.subr.mxu0 %v1791_v0  ;;  %1505 = vmatpush3.msra.mxu1 %v739_v5  ;;  %v650_v10 = vld [vmem:[%s610_s30] sm:$0xff]  ;;  %s637_s30 = scalar_lea.vmem %s2236_s7, %s1993_s28 }
  0x3f   : > { %1494 = vmatpush3.msra.mxu0 %v654_v6  ;;  %1506 = vmatprep.subr.mxu1 %v1791_v0  ;;  %s629_s22 = scalar_lea.vmem %s2237_s5, %s1993_s28  ;;  %v1447_v11 = vld [vmem:[%s637_s30] ss:$0 sm:$0xff] }
  0x40   : > { %1495 = vmatprep.subr.mxu0 %v1791_v0  ;;  %1507 = vmatpush3.msra.mxu1 %v738_v7  ;;  %v1445_v12 = vld [vmem:[%s629_s22] ss:$0 sm:$0xff] }
  0x41   : > { %1496 = vmatpush3.msra.mxu0 %v653_v8  ;;  %1509 = vmatmul.mubr.msk.f32.vlgmr.msra.gmra.mxu1 %vm664_vm1, %v651_v9  ;;  %s618_s17 = scalar_lea.vmem %s2238_s2, %s2016_s24  ;;  %v822_v22 = vld [vmem:[%s642_s4] sm:$0xff]  ;;  %s1444_s4 = sshll.u32 %s1993_s28, 3 }
  0x42   : > { %1498 = vmatmul.mubr.msk.f32.vlgmr.msra.gmra.mxu0 %vm664_vm1, %v650_v10  ;;  %1522 = vmatprep.subr.mxu1 %v1791_v0  ;;  %v652_v23 = vld [vmem:[%s618_s17] sm:$0xff]  ;;  %s621_s24 = scalar_lea.vmem %s2239_s3, %s2011_s21  ;;  %s2241_s17 = sld [smem:[#allocation25_spill]] }
  0x43   : > { %1524 = vmatprep.mubr.msk.f32.mxu1 %vm1792_vm0, %v1791_v0  ;;  %1511 = vmatprep.subr.mxu0 %v1791_v0  ;;  %v984_v26 = vld [vmem:[%s621_s24] sm:$0x1]  ;;  %s645_s19 = scalar_lea.vmem %s2240_s12, %s1993_s28  ;;  %s2083_s24 = sshll.u32 %s2203_s20, 3 }
  0x44   : > { %1519 = vmatprep.mubr.msk.f32.mxu0 %vm1792_vm0, %v1791_v0  ;;  %1512 = vmatpush3.msra.mxu0 %v825_v19  ;;  %v985_v27 = vmul.f32 -1e+09, %v984_v26  ;;  %v1449_v41 = vld [vmem:[%s645_s19] ss:$0 sm:$0xff]  ;;  %s2204_s21 = scalar_lea.vmem [#allocation4], %s2083_s24  ;;  %s596_s28 = scalar_lea.vmem [#allocation2], %s1988_s11 }
  0x45   : > { %1513 = vmatprep.subr.mxu0 %v1791_v0  ;;  %s2242_s19 = sld [smem:[#allocation26_spill]] (!%p1455_p6) }
  0x46   : > { %1514 = vmatpush3.msra.mxu0 %v824_v20  ;;  %v990_v29 = vrot.slane %v985_v27, %v989_v28 }
  0x47   : > { %1515 = vmatprep.subr.mxu0 %v1791_v0 }
  0x48   : > { %1516 = vmatpush3.msra.mxu0 %v823_v21  ;;  %s649_s23 = scalar_lea.vmem %s2241_s17, %s1444_s4 }
  0x49   : > { %1517 = vmatprep.subr.mxu0 %v1791_v0  ;;  %v1078_v44 = vld [vmem:[%s649_s23] sm:$0xff] }
  0x4a   : > { %1518 = vmatpush3.msra.mxu0 %v822_v22 }
  0x4b   : > { %1520 = vmatmul.mubr.msk.f32.vlgmr.msra.gmra.mxu0 %vm664_vm1, %v652_v23  ;;  %1532 = vmatprep.subr.mxu0 %v1791_v0 }
  0x4c   : > { %1534 = vmatprep.mubr.msk.f32.mxu0 %vm1792_vm0, %v1791_v0  ;;  %1533 = vmatpush3.msra.mxu0 %v1078_v44 }
 0x101   : > { %v818_v13 = vpop.f32.mrf.mxu1 }
 0x102   : > { %v734_v14 = vpop.f32.mrf.mxu0  ;;  %v819_v15 = vadd.f32 %v1447_v11, %v818_v13 }
 0x103   : > { %v735_v16 = vadd.f32 %v1445_v12, %v734_v14  ;;  %v1510_v17 = vpop.f32.mrf.mxu1 }
 0x104   : > { %v1499_v18 = vpop.f32.mrf.mxu0  ;;  %1523 = vmatpush3.xpose.msk.msra.mxu1 %vm906_vm2, %v819_v15 }
 0x105   : > { %1527 = vmatprep.subr.mxu1 %v1791_v0 }
 0x107   : > { %1525 = vmatmul.mubr.msk.f32.vlgmr.msra.gmra.mxu1 %vm906_vm2, %v735_v16 }
 0x108   : > { %1529 = vmatprep.mubr.msk.f32.mxu1 %vm1792_vm0, %v1791_v0 }
 0x10b   : > { %v902_v40 = vpop.f32.mrf.mxu0 }
 0x10c   : > { %v903_v42 = vadd.f32 %v1449_v41, %v902_v40 }
 0x10d   : > { %v1521_v43 = vpop.f32.mrf.mxu0 }
 0x10e   : > { %1528 = vmatpush3.msra.mxu1 %v903_v42 }
 0x1c7   : > { %v979_v30 = vpop.f32.mrf.mxu1 }
 0x1c8   : > { %v983_v31 = vmul.f32 0.35355338, %v979_v30 }
 0x1c9   : > { %v1526_v32 = vpop.f32.mrf.mxu1 }
 0x1ca   : > { %v992_v33 = vadd.f32 %v990_v29, %v983_v31 }
 0x1cc   : > { %v993_v34 = vsel %vm906_vm2, %v992_v33, -inf }
 0x1cd   : > { %994 = vmax.xlane.f32.xlu0 %v993_v34 }
 0x256   : > { %v995_v35 = vpop.xlane.xlu0 %994 }
 0x257   : > { %v996_v36 = vsub.f32 %v992_v33, %v995_v35 }
 0x259   : > { %v997_v37 = vmul.f32 1.442695, %v996_v36 }
 0x25b   : > { %1639 = vpow2.f32 %v997_v37 }
 0x268   : > { %v1640_v38 = vpop.eup %1639 }
 0x269   : > { %v999_v39 = vsel %vm906_vm2, %v1640_v38, 0.0 }
 0x26a   : > { %1000 = vadd.xlane.f32.xlu0 %v999_v39 }
 0x2f3   : > { %v1001_v45 = vpop.xlane.xlu0 %1000 }
 0x2f4   : > { %1641 = vrcp.f32 %v1001_v45 }
 0x301   : > { %v1642_v46 = vpop.eup %1641 }
 0x302   : > { %v1003_v47 = vmul.f32 %v1642_v46, %v1640_v38 }
 0x304   : > { %1004 = vst.msk [vmem:[%s2204_s21] sm:$0xff] %vm906_vm2, %v1003_v47  ;;  %1530 = vmatmul.mubr.msk.f32.vlgmr.msra.gmra.mxu1 %vm906_vm2, %v1003_v47 }
 0x3c4   : > { %v1074_v48 = vpop.f32.mrf.mxu1 }
 0x3c5   : > { %1535 = vmatmul.mubr.msk.f32.vlgmr.msra.gmra.mxu0 %vm906_vm2, %v1074_v48 }
 0x3c6   : > { %v1531_v49 = vpop.f32.mrf.mxu1 }
 0x483   : > { %1155 = sbr.rel (%p1455_p6) target bundleno = 1164 (0x48c), region = 72 }
 0x485   : > { %v1148_v50 = vpop.f32.mrf.mxu0 }
 0x487   : > { %v1536_v51 = vpop.f32.mrf.mxu0 }
 0x488   : > { %v1456_v52 = vld [vmem:[%s2242_s19] ss:$0 sm:$0xff] }
 0x489   : > { %v1163_v53 = vadd.f32 %v1456_v52, %v1148_v50 }
 0x48b   : > { %1164 = vst.msk [vmem:[%s596_s28] sm:$0xff] %vm664_vm1, %v1163_v53 }
 0x48c PF: > { %p1457_p8 = scmp.eq.s32.totalorder %s1773_s14, 0 }
 0x48e   : > { %1168 = sbr.rel (%p1457_p8) target bundleno = 1175 (0x497), region = 76 }
 0x493   : > { %v1169_v54 = vld [vmem:[%s596_s28] sm:$0xff] }
 0x494   : > { %v1170_v55 = vadd.f32 %v1169_v54, %v1148_v50 }
 0x496   : > { %1171 = vst.msk [vmem:[%s596_s28] sm:$0xff] %vm664_vm1, %v1170_v55 }
 0x497 PF: > { %s1460_s4 = sshll.u32 %s1777_s15, 7  ;;  %s2244_s17 = sld [smem:[#allocation27_spill]] }
 0x498   : > { %s1192_s12 = sshll.u32 %s596_s28, 4  ;;  %s2246_s19 = sand.u32 1, %s1765_s29   ;;  %s1193_s12 = int_to_ptr.vmem [resolvable:$true] %s1192_s12 }
 0x499   : > { %s1173_s20 = scalar_lea.sflag [#allocation3], %s2246_s19  ;;  %s1643_s21 = scalar_lea.vmem %s1193_s12, 128 }
 0x49a   : > { %p1644_p9 = scmp.ne.s32.totalorder %s1193_s12, %s1643_s21  ;;  %s1793_s0 = smov [#allocation2]  }
 0x49b   : > { %s1647_s1 = sshll.u32 %s1793_s0, 4  ;;  %s1648_s1 = int_to_ptr.vmem [resolvable:$false] %s1647_s1 }
 0x49c   : > { %p1645_p10 = pnand %p1644_p9, %p1936_p3  ;;  %s1649_s2 = scalar_lea.vmem %s1648_s1, 256 }
 0x49d   : > { %s2245_s23 = smov %s2244_s17  ;;  %s1190_s22 = scalar_lea.hbm %s2244_s17, %s1460_s4 }
 0x49e   : > { %p1646_p11 = pneg %p1645_p10  ;;  %p1650_p0 = scmp.lt.s32.totalorder %s1193_s12, %s1648_s1 }
 0x49f   : > { %p1651_p1 = scmp.lt.s32.totalorder %s1649_s2, %s1643_s21 }
 0x4a1   : > { %p1652_p4 = por %p1651_p1, %p1650_p0 }
 0x4a3   : > { %p1653_p2 = pnand %p1652_p4, %p1646_p11 }
 0x4a5   : > { %1656 = shalt.err (!%p1653_p2)
}
 0x4a6   : > { %s1657_s6 = scalar_lea.hbm %s1190_s22, 128  ;;  %s1661_s30 = scalar_lea.hbm %s2245_s23, 256 }
 0x4a7   : > { %p1658_p5 = scmp.ne.s32.totalorder %s1190_s22, %s1657_s6  ;;  %p1662_p9 = scmp.lt.s32.totalorder %s1190_s22, %s2245_s23 }
 0x4a8   : > { %p1663_p10 = scmp.lt.s32.totalorder %s1661_s30, %s1657_s6 }
 0x4a9   : > { %p1659_p6 = pnand %p1658_p5, %p1936_p3 }
 0x4aa   : > { %p1664_p13 = por %p1663_p10, %p1662_p9 }
 0x4ab   : > { %p1660_p8 = pneg %p1659_p6 }
 0x4ad   : > { %p1665_p7 = pnand %p1664_p13, %p1660_p8 }
 0x4af   : > { %1668 = shalt.err (!%p1665_p7)
}
 0x4b0   : > { %1537 = dma.vmem_to_hbm [thread:$0]  (%p1936_p3), %s1193_s12, 128, %s1190_s22, %s1173_s20  }
 0x4b1   : > { %s1461_s0 = sshll.u32 %s1777_s15, 2  ;;  %s2247_s1 = scalar_lea.vmem [#allocation4], %s2083_s24 }
 0x4b2   : > { %s1208_s2 = sshll.u32 %s2247_s1, 4  ;;  %s1204_s21 = sadd.s32 %s1773_s14, %s1461_s0  ;;  %s1209_s2 = int_to_ptr.vmem [resolvable:$true] %s1208_s2 }
 0x4b3   : > { %s1462_s28 = sshll.u32 %s1204_s21, 7  ;;  %s2248_s6 = sld [smem:[#allocation28_spill]] }
 0x4b4   : > { %s2249_s19 = sand.u32 1, %s1753_s26   ;;  %s1669_s5 = scalar_lea.vmem %s1209_s2, 128 }
 0x4b5   : > { %s1178_s3 = scalar_lea.sflag [#allocation5], %s2249_s19  ;;  %p1670_p7 = scmp.ne.s32.totalorder %s1209_s2, %s1669_s5 }
 0x4b6   : > { %s1794_s11 = smov [#allocation4]  }
 0x4b7   : > { %p1671_p13 = pnand %p1670_p7, %p1965_p12  ;;  %s1673_s7 = sshll.u32 %s1794_s11, 4  ;;  %s1674_s7 = int_to_ptr.vmem [resolvable:$false] %s1673_s7 }
 0x4b8   : > { %s1675_s15 = scalar_lea.vmem %s1674_s7, 256  ;;  %p1676_p3 = scmp.lt.s32.totalorder %s1209_s2, %s1674_s7 }
 0x4b9   : > { %s1206_s30 = scalar_lea.hbm %s2248_s6, %s1462_s28  ;;  %p1672_p11 = pneg %p1671_p13 }
 0x4ba   : > { %p1677_p0 = scmp.lt.s32.totalorder %s1675_s15, %s1669_s5 }
 0x4bc   : > { %p1678_p1 = por %p1677_p0, %p1676_p3 }
 0x4be   : > { %p1679_p4 = pnand %p1678_p1, %p1672_p11 }
 0x4c0   : > { %1682 = shalt.err (!%p1679_p4)
}
 0x4c1   : > { %s1683_s14 = scalar_lea.hbm %s1206_s30, 128  ;;  %s1687_s22 = scalar_lea.hbm %s2248_s6, 1024 }
 0x4c2   : > { %p1684_p2 = scmp.ne.s32.totalorder %s1206_s30, %s1683_s14  ;;  %p1688_p8 = scmp.lt.s32.totalorder %s1206_s30, %s2248_s6 }
 0x4c3   : > { %p1689_p9 = scmp.lt.s32.totalorder %s1687_s22, %s1683_s14 }
 0x4c4   : > { %p1685_p5 = pnand %p1684_p2, %p1965_p12 }
 0x4c5   : > { %p1690_p10 = por %p1689_p9, %p1688_p8 }
 0x4c6   : > { %p1686_p6 = pneg %p1685_p5 }
 0x4c8   : > { %p1691_p7 = pnand %p1690_p10, %p1686_p6 }
 0x4ca   : > { %1694 = shalt.err (!%p1691_p7)
}
 0x4cb   : > { %1538 = dma.vmem_to_hbm [thread:$0]  (%p1965_p12), %s1209_s2, 128, %s1206_s30, %s1178_s3  }
 0x4cc PF: > { %s2250_s5 = sld [smem:[#allocation8_spill]]  ;;  %p1548_p13 = scmp.ge.s32.totalorder %s1789_s18, 2 }
 0x4cd   : > { %p2251_p11 = scmp.ne.s32.totalorder %s2228_s10, 0 }
 0x4cf   : > { %p1542_p3 = pnand %p1548_p13, %p2251_p11 }
 0x4d1   : > { %p1543_p0 = pneg %p1542_p3 }
 0x4d2   : > { %s1220_s7 = sand.u32 1, %s2250_s5  }
 0x4d3   : > { %s1221_s1 = scalar_lea.sflag [#allocation3], %s1220_s7 }
 0x4d4   : > { %1740 = dma.done.wait (%p1543_p0), %s1221_s1, 128  }
 0x4d5   : > { %1742 = vsyncadd (%p1543_p0), %s1221_s1, 4294967168  ;;  %s1229_s21 = sand.u32 1, %s1749_s25   ;;  %p2252_p1 = scmp.ne.s32.totalorder %s2231_s9, 0 }
 0x4d6   : > { %s1230_s13 = scalar_lea.sflag [#allocation5], %s1229_s21 }
 0x4d7   : > { %p1545_p4 = pnand %p1548_p13, %p2252_p1 }
 0x4d9   : > { %p1546_p2 = pneg %p1545_p4 }
 0x4db   : > { %1744 = dma.done.wait (%p1546_p2), %s1230_s13, 128  }
 0x4dc   : > { %1746 = vsyncadd (%p1546_p2), %s1230_s13, 4294967168  ;;  %s30_s18 = sadd.s32 1, %s1789_s18   ;;  %s2253_s3 = sld [smem:[#allocation9_spill]] }
 0x4dd   : > { %p27_p12 = scmp.ge.s32.totalorder %s30_s18, 10   ;;  %s2254_s30 = sld [smem:[#allocation15_spill]] }
 0x4de   : > { %s2255_s14 = sld [smem:[#allocation10_spill]]  ;;  %s2259_s25 = smov %s1753_s26 }
 0x4df   : > { %s2256_s15 = sld [smem:[#allocation11_spill]]  ;;  %s2260_s26 = smov %s1757_s27 }
 0x4e0   : > { %s2257_s10 = sld [smem:[#allocation12_spill]]  ;;  %s2261_s27 = smov %s1973_s16 }
 0x4e1   : > { %s2258_s17 = sld [smem:[#allocation14_spill]]  ;;  %s2262_s28 = smov %s1765_s29 }
 0x4e2   : > { %s2263_s29 = smov %s2253_s3  ;;  %29 = sbr.rel (!%p27_p12) target bundleno = 23 (0x17), region = 158 }
 0x4e6   : > { %s2264_s16 = smov %s2257_s10 }
 0x4e7   :  { %1235 = vsyncpa [#allocation3], 1 }
 0x4e8   :  { %1237 = vsyncpa [#allocation3 + $0x1], 1 }
 0x4e9   :  { %1238 = vsyncpa [#allocation5], 1 }
 0x4ea   :  { %1240 = vsyncpa [#allocation5 + $0x1], 1 }

</bundles_post_ra>
